<compile_context>
chip_gen: v7x
topology: tpu7x:2x2x1
jax: 0.10.0
libtpu: 0.0.40
codegen_flags: <defaults>
</compile_context>

<pallas_src>
import jax
import jax.numpy as jnp
from jax.experimental import pallas as pl
from jax.experimental.pallas import tpu as pltpu


def _round_up(x: int, m: int) -> int:
    return ((x + m - 1) // m) * m


def pushcr_kernel(ue_ref, diff_ref, out_ref):
    """Hot path of PPushCR.forward in lane-dense (F, tb) layout:
       out = sum(user_emb * (pos_item_emb - neg_item_emb), F)
    which equals (ue*pe).sum(-1) - (ue*ne).sum(-1) of the PyTorch module.
    """
    u = ue_ref[...]                                            # (F, tb)
    d = diff_ref[...]                                          # (F, tb)
    out_ref[...] = jnp.sum(u * d, axis=0, keepdims=True)       # (1, tb) lane-dense store


def ppushcr_forward(user_embeddings, item_embeddings, users, pos_items, neg_items,
                    *, tb=16384, min_pallas_batch=8192, force_pallas=False):
    """Equivalent of PPushCR.forward(users, pos_items, neg_items).

    Embedding gather + (pos-neg) diff + transpose/pad are XLA glue (expected to
    fuse into two (F, B_pad) writes); the multiply / fused-reduce hot path runs
    in the Pallas kernel, tiled over the batch on the 128-lane axis.
    """
    B = users.shape[0]

    ue = jnp.take(user_embeddings, users, axis=0)      # (B, F)
    pe = jnp.take(item_embeddings, pos_items, axis=0)  # (B, F)
    ne = jnp.take(item_embeddings, neg_items, axis=0)  # (B, F)

    # Size guard: below ~8K rows the pallas_call launch/pipeline overhead
    # exceeds the work; let XLA fuse the trivial pattern instead.
    if not force_pallas and B < min_pallas_batch:
        return (ue * pe).sum(-1) - (ue * ne).sum(-1)

    F = ue.shape[1]

    # Fuse the subtraction into the XLA gather epilogue so the kernel only
    # streams 2 arrays (u, diff) instead of 3.
    diff = pe - ne                                     # (B, F)

    # Lane-dense layout: batch -> 128-lane axis, factors -> sublanes.
    # TODO(synk): in-kernel gather (scalar-prefetch indices + VMEM-resident
    # tables) would remove these materialized (F, B_pad) intermediates entirely;
    # left out for lowering robustness of dynamic gathers at F=20.
    # TODO(synk): bf16 embedding storage would halve HBM traffic but changes
    # numerics of the reference module, so it is not applied here.
    ue_t, diff_t = ue.T, diff.T                        # (F, B)

    # Pad only to the 128-lane granule (NOT to a multiple of the tile) — the
    # ragged last block is handled by Pallas and the padded lanes are sliced off.
    B_pad = _round_up(B, 128)
    if B_pad != B:
        pad = ((0, 0), (0, B_pad - B))
        ue_t = jnp.pad(ue_t, pad)
        diff_t = jnp.pad(diff_t, pad)

    # Batch tile: big (16K lanes) to amortize per-step overhead, but capped so
    # the grid has >= 2 steps when possible (v7x megacore sharding). Always a
    # multiple of 128. VMEM: 2 inputs x 2 bufs x (F x tb x 4B) ~= 5 MiB at 16K.
    half = _round_up(max(128, (B_pad + 1) // 2), 128)
    tb_eff = int(min(int(tb), half))
    grid = pl.cdiv(B_pad, tb_eff)

    out = pl.pallas_call(
        pushcr_kernel,
        out_shape=jax.ShapeDtypeStruct((1, B_pad), ue.dtype),
        grid_spec=pltpu.PrefetchScalarGridSpec(
            num_scalar_prefetch=0,
            grid=(grid,),
            in_specs=[
                pl.BlockSpec((F, tb_eff), lambda i: (0, i)),
                pl.BlockSpec((F, tb_eff), lambda i: (0, i)),
            ],
            out_specs=pl.BlockSpec((1, tb_eff), lambda i: (0, i)),
        ),
        # "parallel" lets v7x shard the batch loop across its 2 TensorCores;
        # no-op on v5e/v6e. Default double-buffering is enough at this tile size.
        compiler_params=pltpu.CompilerParams(dimension_semantics=("parallel",)),
    )(ue_t, diff_t)

    return out[0, :B]  # drop padding; matches preds.squeeze(-1) in PyTorch


if __name__ == "__main__":
    # Small, deterministic setup consistent with the module:
    #   n_users, n_items from "data", n_factors=20 embedding dim.
    n_users, n_items, n_factors = 16, 32, 20
    B = 16  # flattened (pos, neg) pair batch

    key = jax.random.PRNGKey(0)
    k_ue, k_ie, k_u, k_p, k_n = jax.random.split(key, 5)

    # user_embeddings: normal(mean=0, std=0.1) as in __init__;
    # item_embeddings: default nn.Embedding init ~ N(0, 1).
    user_embeddings = 0.1 * jax.random.normal(k_ue, (n_users, n_factors), dtype=jnp.float32)
    item_embeddings = jax.random.normal(k_ie, (n_items, n_factors), dtype=jnp.float32)
    # TODO(synk): user_biases / item_biases exist in __init__ but are unused in forward(); omitted.

    users = jax.random.randint(k_u, (B,), 0, n_users)
    pos_items = jax.random.randint(k_p, (B,), 0, n_items)
    neg_items = jax.random.randint(k_n, (B,), 0, n_items)

    # force_pallas=True so the Pallas path is exercised even at this tiny batch.
    preds = ppushcr_forward(user_embeddings, item_embeddings, users, pos_items,
                            neg_items, force_pallas=True)
    preds = jax.block_until_ready(preds)

    # Pure-JAX reference of the PyTorch forward pass.
    ue = user_embeddings[users]
    ref = (ue * item_embeddings[pos_items]).sum(-1) - (ue * item_embeddings[neg_items]).sum(-1)

    assert preds.shape == (B,)
    assert jnp.allclose(preds, ref, atol=1e-5, rtol=1e-5)
    print("KERNEL_OK")
</pallas_src>

<mosaic_0001>
module attributes {stable_mosaic.version = 11 : i64} {
  func.func @pushcr_kernel(%arg0: i32, %arg1: memref<20x128xf32, #tpu.memory_space<vmem>>, %arg2: memref<20x128xf32, #tpu.memory_space<vmem>>, %arg3: memref<1x128xf32, #tpu.memory_space<vmem>>) attributes {dimension_semantics = [#tpu.dimension_semantics<parallel>], iteration_bounds = array<i64: 1>, scalar_prefetch = 0 : i64, scratch_operands = 0 : i64, tpu.core_type = #tpu.core_type<tc>, window_params = [{transform_indices = @transform_0, window_bounds = array<i64: 20, 128>}, {transform_indices = @transform_1, window_bounds = array<i64: 20, 128>}, {transform_indices = @transform_2, window_bounds = array<i64: 1, 128>}]} {
    %c0 = arith.constant 0 : index
    %c0_0 = arith.constant 0 : index
    %0 = vector.load %arg1[%c0, %c0_0] : memref<20x128xf32, #tpu.memory_space<vmem>>, vector<20x128xf32>
    %c0_1 = arith.constant 0 : index
    %c0_2 = arith.constant 0 : index
    %1 = vector.load %arg2[%c0_1, %c0_2] : memref<20x128xf32, #tpu.memory_space<vmem>>, vector<20x128xf32>
    %2 = arith.mulf %0, %1 : vector<20x128xf32>
    %cst = arith.constant dense<0.000000e+00> : vector<128xf32>
    %3 = vector.multi_reduction <add>, %2, %cst [0] : vector<20x128xf32> to vector<128xf32>
    %4 = vector.shape_cast %3 : vector<128xf32> to vector<1x128xf32>
    %c0_3 = arith.constant 0 : index
    %c0_4 = arith.constant 0 : index
    %5 = vector.load %arg3[%c0_3, %c0_4] : memref<1x128xf32, #tpu.memory_space<vmem>>, vector<1x128xf32>
    tpu.vector_store %arg3[%c0_3, %c0_4], %4 {strides = array<i32>} : memref<1x128xf32, #tpu.memory_space<vmem>>, vector<1x128xf32>,
    return
  }
  func.func @transform_0(%arg0: i32) -> (i32, i32) {
    %c0_i32 = arith.constant 0 : i32
    %c0_i32_0 = arith.constant 0 : i32
    return %c0_i32, %arg0 : i32, i32
  }
  func.func @transform_1(%arg0: i32) -> (i32, i32) {
    %c0_i32 = arith.constant 0 : i32
    %c0_i32_0 = arith.constant 0 : i32
    return %c0_i32, %arg0 : i32, i32
  }
  func.func @transform_2(%arg0: i32) -> (i32, i32) {
    %c0_i32 = arith.constant 0 : i32
    %c0_i32_0 = arith.constant 0 : i32
    return %c0_i32, %arg0 : i32, i32
  }
}

</mosaic_0001>

<bundles_post_ra>
// kernel: tpu_custom_call.1
= control target key start
LH: loop header
LB: loop body
LE: loop exit
PB: predicated region body
PF: predicated region fallthrough
CT: control target
= control target key end

     0   :  { %7 = vsyncpa [#allocation3], 0  ;;  %s209_s0 = inlined_call_operand.hbm [shape: f32[20,128], index: 0, kind: input, shape index: {}]   ;;  %s210_s1 = inlined_call_operand.hbm [shape: f32[20,128], index: 1, kind: input, shape index: {}]   ;;  %s211_s2 = inlined_call_operand.hbm [shape: f32[1,128], index: 2, kind: output, shape index: {}]  }
   0x1   :  { %8 = vsyncpa [#allocation6], 0 }
   0x2   :  { %9 = vsyncpa [#allocation4], 0  ;;  %s153_s9 = smov [#allocation2]   ;;  %s81_s13 = scalar_lea.hbm %s209_s0, 384 }
   0x3   :  { %s15_s10 = sshll.u32 %s153_s9, 4  ;;  %p82_p0 = scmp.ne.s32.totalorder %s209_s0, %s81_s13  ;;  %s16_s10 = int_to_ptr.vmem [resolvable:$true] %s15_s10 }
   0x4   :  { %p85_p1 = scmp.lt.u32.totalorder %s81_s13, %s209_s0 }
   0x6   :  { %p87_p2 = pnand %p85_p1, %p82_p0 }
   0x8   :  { %90 = shalt.err (!%p87_p2)
}
   0x9   :  { %s91_s18 = scalar_lea.vmem %s16_s10, 384  ;;  %p96_p4 = scmp.lt.s32.totalorder %s16_s10, %s16_s10 }
   0xa   :  { %p92_p3 = scmp.ne.s32.totalorder %s16_s10, %s91_s18  ;;  %p97_p5 = scmp.lt.s32.totalorder %s91_s18, %s91_s18 }
   0xc   :  { %p98_p6 = por %p97_p5, %p96_p4 }
   0xe   :  { %p99_p7 = pnand %p98_p6, %p92_p3 }
  0x10   :  { %102 = shalt.err (!%p99_p7)
}
  0x11   :  { %s154_s19 = smov 128   ;;  %s155_s20 = smov 8  }
  0x12   :  { %21 = dma.hbm_to_vmem [thread:$0]  %s209_s0, 384, %s16_s10, [#allocation3], %s154_s19, %s154_s19, %s155_s20  }
  0x13   :  { %s156_s23 = smov [#allocation5]   ;;  %s103_s27 = scalar_lea.hbm %s210_s1, 384 }
  0x14   :  { %s27_s24 = sshll.u32 %s156_s23, 4  ;;  %p104_p8 = scmp.ne.s32.totalorder %s210_s1, %s103_s27  ;;  %s28_s24 = int_to_ptr.vmem [resolvable:$true] %s27_s24 }
  0x15   :  { %p107_p9 = scmp.lt.u32.totalorder %s103_s27, %s210_s1 }
  0x17   :  { %p109_p10 = pnand %p107_p9, %p104_p8 }
  0x19   :  { %112 = shalt.err (!%p109_p10)
}
  0x1a   :  { %s113_s4 = scalar_lea.vmem %s28_s24, 384  ;;  %p118_p12 = scmp.lt.s32.totalorder %s28_s24, %s28_s24 }
  0x1b   :  { %p114_p11 = scmp.ne.s32.totalorder %s28_s24, %s113_s4  ;;  %p119_p13 = scmp.lt.s32.totalorder %s113_s4, %s113_s4 }
  0x1d   :  { %p120_p0 = por %p119_p13, %p118_p12 }
  0x1f   :  { %p121_p1 = pnand %p120_p0, %p114_p11 }
  0x21   :  { %124 = shalt.err (!%p121_p1)
}
  0x22   :  { %33 = dma.hbm_to_vmem [thread:$0]  %s210_s1, 384, %s28_s24, [#allocation6], %s154_s19, %s154_s19, %s155_s20  }
  0x23   :  { %147 = dma.done.wait [#allocation3], 384  }
  0x24   :  { %148 = vsyncadd [#allocation3], 4294966912 }
  0x25   :  { %149 = dma.done.wait [#allocation6], 384  }
  0x26   :  { %150 = vsyncadd [#allocation6], 4294966912  ;;  %v40_v0 = vld [vmem:[#allocation2] sm:$0xff]  ;;  %v41_v1 = vld [vmem:[#allocation2 + $0x8] sm:$0xff]  ;;  %vm50_vm0 = vcmask 1043456   ;;  %s157_s1 = smov [#allocation7]  }
  0x27   :  { %v42_v2 = vld [vmem:[#allocation2 + $0x10] sm:$0xf]  ;;  %v43_v3 = vld [vmem:[#allocation5] sm:$0xff]  ;;  %v44_v4 = vld [vmem:[#allocation5 + $0x8] sm:$0xff]  ;;  %s66_s6 = sshll.u32 %s157_s1, 4  ;;  %s67_s6 = int_to_ptr.vmem [resolvable:$true] %s66_s6 }
  0x28   :  { %v45_v5 = vld [vmem:[#allocation5 + $0x10] sm:$0xf]  ;;  %v46_v6 = vmul.f32 %v43_v3, %v40_v0  ;;  %v47_v7 = vmul.f32 %v44_v4, %v41_v1  ;;  %s125_s7 = scalar_lea.vmem %s67_s6, 16  ;;  %s129_s8 = scalar_lea.vmem %s67_s6, 32 }
  0x29   :  { %v48_v8 = vmul.f32 %v45_v5, %v42_v2  ;;  %p126_p2 = scmp.ne.s32.totalorder %s67_s6, %s125_s7  ;;  %p130_p3 = scmp.lt.s32.totalorder %s67_s6, %s67_s6 }
  0x2a   :  { %v49_v9 = vadd.f32 %v47_v7, %v46_v6  ;;  %p131_p4 = scmp.lt.s32.totalorder %s129_s8, %s125_s7 }
  0x2b   :  { %v51_v10 = vsel %vm50_vm0, %v48_v8, 0.0 }
  0x2c   :  { %v52_v11 = vadd.f32 %v51_v10, %v49_v9  ;;  %p132_p5 = por %p131_p4, %p130_p3 }
  0x2e   :  { %v53_v12 = vrot.slane %v52_v11, 4  ;;  %p133_p6 = pnand %p132_p5, %p126_p2 }
  0x30   :  { %v54_v13 = vadd.f32 %v53_v12, %v52_v11 }
  0x32   :  { %v55_v14 = vrot.slane %v54_v13, 2 }
  0x34   :  { %v56_v15 = vadd.f32 %v55_v14, %v54_v13 }
  0x36   :  { %v57_v16 = vrot.slane %v56_v15, 1 }
  0x38   :  { %v58_v17 = vadd.f32 %v57_v16, %v56_v15 }
  0x3a   :  { %59 = vst [vmem:[#allocation7] sm:$0x1] %v58_v17 }
  0x3b   :  { %136 = shalt.err (!%p133_p6)
}
  0x3c   :  { %s137_s11 = scalar_lea.hbm %s211_s2, 16 }
  0x3d   :  { %p138_p7 = scmp.ne.s32.totalorder %s211_s2, %s137_s11  ;;  %p141_p8 = scmp.lt.u32.totalorder %s137_s11, %s211_s2 }
  0x3f   :  { %p143_p9 = pnand %p141_p8, %p138_p7 }
  0x41   :  { %146 = shalt.err (!%p143_p9)
}
  0x42   :  { %69 = dma.vmem_to_hbm [thread:$0]  %s67_s6, 16, %s211_s2, [#allocation4]  }
  0x43   :  { %151 = dma.done.wait [#allocation4], 16  }
  0x44   :  { %152 = vsyncadd [#allocation4], 4294967280 }
  0x45   :  { %73 = vsyncpa [#allocation3], 1 }
  0x46   :  { %74 = vsyncpa [#allocation6], 1 }
  0x47   :  { %75 = vsyncpa [#allocation4], 1 }

</bundles_post_ra>
